<compile_context>
chip_gen: v7x
topology: tpu7x:2x2x1
jax: 0.10.0
libtpu: 0.0.40
codegen_flags: <defaults>
</compile_context>

<pallas_src>
import jax
import jax.numpy as jnp
from jax.experimental import pallas as pl
from jax.experimental.pallas import tpu as pltpu


def _make_flops_kernel(D, tile_d, tiles_per_split):
    def kernel(x_ref, o_ref, acc_ref):
        s = pl.program_id(0)   # column split (parallel axis; 2 TCs on v7x)
        j = pl.program_id(1)   # column slab within the split (reduction axis)
        nj = pl.num_programs(1)

        @pl.when(j == 0)
        def _():
            acc_ref[...] = jnp.zeros_like(acc_ref)

        # |x| in f32 (input may be bf16; accumulate in f32).
        x = jnp.abs(x_ref[...].astype(jnp.float32))               # (B, tile_d)

        # Mask columns past D (tail tile and clamped phantom tiles).
        col0 = (s * tiles_per_split + j) * tile_d
        lane = jax.lax.broadcasted_iota(jnp.int32, x.shape, 1)
        x = jnp.where(col0 + lane < D, x, 0.0)

        # Per-column sum over the batch (sublane reduce); keep 2-D layout.
        col_sum = jnp.sum(x, axis=0, keepdims=True)               # (1, tile_d)
        acc_ref[...] += col_sum * col_sum                         # VPU only

        # Finalize once per split: single cross-lane reduce + lane-dense store.
        @pl.when(j == nj - 1)
        def _():
            total = jnp.sum(acc_ref[...])
            o_ref[...] = jnp.broadcast_to(total, o_ref.shape).astype(jnp.float32)

    return kernel


def _pick_tile_d(B, D, itemsize, target_bytes):
    """Largest multiple-of-128 column slab with B * tile_d * itemsize <= target."""
    d_pad = -(-D // 128) * 128
    per_col = max(1, B * itemsize)
    t = (target_bytes // per_col) // 128 * 128
    t = max(128, t)
    return int(min(t, d_pad))


def flops_loss(batch_rep: jax.Array, *, tile_d=None, target_bytes=4 << 20) -> jax.Array:
    """Pallas implementation of the FLOPS regularizer. Returns a scalar (f32)."""
    B, D = batch_rep.shape
    itemsize = jnp.dtype(batch_rep.dtype).itemsize
    if tile_d is None:
        tile_d = _pick_tile_d(B, D, itemsize, target_bytes)
    assert tile_d % 128 == 0

    tiles_total = -(-D // tile_d)                 # cdiv
    n_split = 2 if tiles_total >= 2 else 1        # split columns across 2 TCs (v7x)
    tiles_per_split = -(-tiles_total // n_split)  # cdiv
    grid = (n_split, tiles_per_split)

    def x_index_map(s, j):
        t = s * tiles_per_split + j
        # Clamp phantom tiles (fully past D) onto the last valid tile; their
        # contribution is masked to zero inside the kernel.
        return (0, jnp.minimum(t, tiles_total - 1))

    # Raise the scoped-VMEM limit only if the chosen slab actually needs it
    # (default scoped limits: 16 MiB v5e / 32 MiB v6e,v7x).
    vmem_need = 2 * B * tile_d * itemsize + 8 * tile_d + (64 << 10)
    vmem_limit = None if vmem_need <= (16 << 20) else min(int(vmem_need * 5 // 4), 96 << 20)

    out = pl.pallas_call(
        _make_flops_kernel(D, tile_d, tiles_per_split),
        out_shape=jax.ShapeDtypeStruct((n_split, 8, 128), jnp.float32),
        grid=grid,
        in_specs=[pl.BlockSpec((B, tile_d), x_index_map)],
        out_specs=pl.BlockSpec((1, 8, 128), lambda s, j: (s, 0, 0)),
        scratch_shapes=[pltpu.VMEM((1, tile_d), jnp.float32)],
        compiler_params=pltpu.CompilerParams(
            dimension_semantics=("parallel", "arbitrary"),
            vmem_limit_bytes=vmem_limit,
        ),
    )(batch_rep)

    # Hoisted normalization: sum_d (colsum_d / B)^2 == (sum_d colsum_d^2) / B^2.
    partials = out[:, 0, 0]                       # one partial per column split
    return jnp.sum(partials) * (1.0 / float(B * B))


if __name__ == "__main__":
    key = jax.random.PRNGKey(0)
    k0, k1 = jax.random.split(key)

    # Main case: small (batch, dim) representation, f32, single wide slab.
    B, D = 8, 256
    batch_rep = jax.random.normal(k0, (B, D), dtype=jnp.float32)
    result = jax.block_until_ready(flops_loss(batch_rep))
    ref = jnp.sum(jnp.mean(jnp.abs(batch_rep), axis=0) ** 2)
    assert jnp.allclose(result, ref, rtol=1e-5, atol=1e-5), (result, ref)

    # Extra check: bf16 input, D not a multiple of the tile -> exercises the
    # two-way column split, tail masking, and phantom-tile clamping.
    B2, D2 = 8, 320
    x2 = jax.random.normal(k1, (B2, D2), dtype=jnp.bfloat16)
    r2 = jax.block_until_ready(flops_loss(x2, tile_d=128))
    ref2 = jnp.sum(jnp.mean(jnp.abs(x2.astype(jnp.float32)), axis=0) ** 2)
    assert jnp.allclose(r2, ref2, rtol=1e-4, atol=1e-4), (r2, ref2)

    print("KERNEL_OK")
</pallas_src>

<mosaic_0001>
module attributes {stable_mosaic.version = 11 : i64} {
  func.func @kernel(%arg0: i32, %arg1: i32, %arg2: memref<8x256xf32, #tpu.memory_space<vmem>>, %arg3: memref<1x8x128xf32, #tpu.memory_space<vmem>>, %arg4: memref<1x256xf32, #tpu.memory_space<vmem>>) attributes {dimension_semantics = [#tpu.dimension_semantics<parallel>, #tpu.dimension_semantics<arbitrary>], iteration_bounds = array<i64: 1, 1>, scalar_prefetch = 0 : i64, scratch_operands = 1 : i64, tpu.core_type = #tpu.core_type<tc>, window_params = [{transform_indices = @transform_0, window_bounds = array<i64: 8, 256>}, {transform_indices = @transform_1, window_bounds = array<i64: 1, 8, 128>}]} {
    %c0_i32 = arith.constant 0 : i32
    %0 = arith.cmpi eq, %arg1, %c0_i32 : i32
    %1 = arith.extui %0 : i1 to i32
    %c0_i32_0 = arith.constant 0 : i32
    %2 = arith.cmpi ne, %1, %c0_i32_0 : i32
    scf.if %2 {
      %cst_10 = arith.constant 0.000000e+00 : f32
      %24 = vector.broadcast %cst_10 : f32 to vector<1x256xf32>
      %c0_11 = arith.constant 0 : index
      %c0_12 = arith.constant 0 : index
      %25 = vector.load %arg4[%c0_11, %c0_12] : memref<1x256xf32, #tpu.memory_space<vmem>>, vector<1x256xf32>
      tpu.vector_store %arg4[%c0_11, %c0_12], %24 {strides = array<i32>} : memref<1x256xf32, #tpu.memory_space<vmem>>, vector<1x256xf32>,
    } else {
    }
    %c0 = arith.constant 0 : index
    %c0_1 = arith.constant 0 : index
    %3 = vector.load %arg2[%c0, %c0_1] : memref<8x256xf32, #tpu.memory_space<vmem>>, vector<8x256xf32>
    %4 = math.absf %3 : vector<8x256xf32>
    %c1_i32 = arith.constant 1 : i32
    %5 = arith.muli %arg0, %c1_i32 : i32
    %6 = arith.addi %5, %arg1 : i32
    %c256_i32 = arith.constant 256 : i32
    %7 = arith.muli %6, %c256_i32 : i32
    %8 = tpu.iota {dimensions = array<i32: 1>} : vector<8x256xi32>
    %9 = vector.broadcast %7 : i32 to vector<8x256xi32>
    %10 = arith.addi %9, %8 : vector<8x256xi32>
    %c256_i32_2 = arith.constant 256 : i32
    %11 = vector.broadcast %c256_i32_2 : i32 to vector<8x256xi32>
    %12 = arith.cmpi slt, %10, %11 : vector<8x256xi32>
    %cst = arith.constant 0.000000e+00 : f32
    %13 = vector.broadcast %cst : f32 to vector<8x256xf32>
    %14 = arith.select %12, %4, %13 : vector<8x256xi1>, vector<8x256xf32>
    %cst_3 = arith.constant dense<0.000000e+00> : vector<256xf32>
    %15 = vector.multi_reduction <add>, %14, %cst_3 [0] : vector<8x256xf32> to vector<256xf32>
    %16 = vector.shape_cast %15 : vector<256xf32> to vector<1x256xf32>
    %c0_4 = arith.constant 0 : index
    %c0_5 = arith.constant 0 : index
    %17 = vector.load %arg4[%c0_4, %c0_5] : memref<1x256xf32, #tpu.memory_space<vmem>>, vector<1x256xf32>
    %18 = arith.mulf %16, %16 : vector<1x256xf32>
    %19 = arith.addf %17, %18 : vector<1x256xf32>
    %c0_6 = arith.constant 0 : index
    %c0_7 = arith.constant 0 : index
    %20 = vector.load %arg4[%c0_6, %c0_7] : memref<1x256xf32, #tpu.memory_space<vmem>>, vector<1x256xf32>
    tpu.vector_store %arg4[%c0_6, %c0_7], %19 {strides = array<i32>} : memref<1x256xf32, #tpu.memory_space<vmem>>, vector<1x256xf32>,
    %c0_i32_8 = arith.constant 0 : i32
    %21 = arith.cmpi eq, %arg1, %c0_i32_8 : i32
    %22 = arith.extui %21 : i1 to i32
    %c0_i32_9 = arith.constant 0 : i32
    %23 = arith.cmpi ne, %22, %c0_i32_9 : i32
    scf.if %23 {
      %c0_10 = arith.constant 0 : index
      %c0_11 = arith.constant 0 : index
      %24 = vector.load %arg4[%c0_10, %c0_11] : memref<1x256xf32, #tpu.memory_space<vmem>>, vector<1x256xf32>
      %25 = vector.shape_cast %24 : vector<1x256xf32> to vector<1x1x256xf32>
      %cst_12 = arith.constant dense<0.000000e+00> : vector<1xf32>
      %26 = vector.multi_reduction <add>, %25, %cst_12 [1, 2] : vector<1x1x256xf32> to vector<1xf32>
      %27 = vector.shape_cast %26 : vector<1xf32> to vector<1x1x1xf32>
      %28 = vector.extract %27[0, 0, 0] : f32 from vector<1x1x1xf32>
      %29 = vector.broadcast %28 : f32 to vector<1x8x128xf32>
      %c0_13 = arith.constant 0 : index
      %c0_14 = arith.constant 0 : index
      %c0_15 = arith.constant 0 : index
      %30 = vector.load %arg3[%c0_13, %c0_14, %c0_15] : memref<1x8x128xf32, #tpu.memory_space<vmem>>, vector<1x8x128xf32>
      tpu.vector_store %arg3[%c0_13, %c0_14, %c0_15], %29 {strides = array<i32>} : memref<1x8x128xf32, #tpu.memory_space<vmem>>, vector<1x8x128xf32>,
    } else {
    }
    return
  }
  func.func @transform_0(%arg0: i32, %arg1: i32) -> (i32, i32) {
    %c1_i32 = arith.constant 1 : i32
    %0 = arith.muli %arg0, %c1_i32 : i32
    %1 = arith.addi %0, %arg1 : i32
    %c0_i32 = arith.constant 0 : i32
    %2 = arith.minsi %1, %c0_i32 : i32
    %c0_i32_0 = arith.constant 0 : i32
    %c0_i32_1 = arith.constant 0 : i32
    return %c0_i32_0, %2 : i32, i32
  }
  func.func @transform_1(%arg0: i32, %arg1: i32) -> (i32, i32, i32) {
    %c0_i32 = arith.constant 0 : i32
    %c0_i32_0 = arith.constant 0 : i32
    %c0_i32_1 = arith.constant 0 : i32
    return %arg0, %c0_i32, %c0_i32_0 : i32, i32, i32
  }
}

</mosaic_0001>

<bundles_post_ra>
// kernel: tpu_custom_call.1
= control target key start
LH: loop header
LB: loop body
LE: loop exit
PB: predicated region body
PF: predicated region fallthrough
CT: control target
= control target key end

     0   :  { %6 = vsyncpa [#allocation4], 0  ;;  %s242_s0 = inlined_call_operand.hbm [shape: f32[8,256], index: 0, kind: input, shape index: {}]   ;;  %s243_s1 = inlined_call_operand.hbm [shape: f32[1,8,128], index: 1, kind: output, shape index: {}]  }
   0x1   :  { %7 = vsyncpa [#allocation5], 0  ;;  %s196_s6 = smov [#allocation3]   ;;  %s148_s10 = scalar_lea.hbm %s242_s0, 256 }
   0x2   :  { %s20_s7 = sshll.u32 %s196_s6, 4  ;;  %p149_p0 = scmp.ne.s32.totalorder %s242_s0, %s148_s10  ;;  %s21_s7 = int_to_ptr.vmem [resolvable:$true] %s20_s7 }
   0x3   :  { %p152_p1 = scmp.lt.u32.totalorder %s148_s10, %s242_s0 }
   0x5   :  { %p154_p2 = pnand %p152_p1, %p149_p0 }
   0x7   :  { %157 = shalt.err (!%p154_p2)
}
   0x8   :  { %s158_s15 = scalar_lea.vmem %s21_s7, 256  ;;  %p163_p4 = scmp.lt.s32.totalorder %s21_s7, %s21_s7 }
   0x9   :  { %p159_p3 = scmp.ne.s32.totalorder %s21_s7, %s158_s15  ;;  %p164_p5 = scmp.lt.s32.totalorder %s158_s15, %s158_s15 }
   0xb   :  { %p165_p6 = por %p164_p5, %p163_p4 }
   0xd   :  { %p166_p7 = pnand %p165_p6, %p159_p3 }
   0xf   :  { %169 = shalt.err (!%p166_p7)
}
  0x10   :  { %23 = dma.hbm_to_vmem [thread:$0]  %s242_s0, 256, %s21_s7, [#allocation4]  }
  0x11   :  { %192 = dma.done.wait [#allocation4], 256  }
  0x12   :  { %193 = vsyncadd [#allocation4], 4294967040  ;;  %v35_v0 = vlaneseq  ;;  %v197_v2 = vmov 0.0   ;;  %v40_v3 = vld [vmem:[#allocation3] sm:$0xff]  ;;  %v41_v4 = vld [vmem:[#allocation3 + $0x8] sm:$0xff]  ;;  %vm110_vm1 = vcmask 1040384  }
  0x13   :  { %v42_v5 = vand.u32 2147483647, %v40_v3  ;;  %v43_v6 = vand.u32 2147483647, %v41_v4  ;;  %v198_v13 = vmov 1966171168  }
  0x14   :  { %vm222_vm0 = vcmp.lt.s32.totalorder %v35_v0, 256  ;;  %v75_v14 = vunpack.c.l.s4 %v198_v13  ;;  %v78_v20 = vshrl.u32 %v35_v0, 7  ;;  %s199_s0 = smov [#allocation6]  }
  0x15   :  { %39 = vst.msk [vmem:[#allocation2] sm:$0x3] %vm222_vm0, %v197_v2  ;;  %v56_v7 = vrot.slane %v42_v5, 4  ;;  %v62_v8 = vrot.slane %v43_v6, 4  ;;  %s131_s18 = sshll.u32 %s199_s0, 4  ;;  %s132_s18 = int_to_ptr.vmem [resolvable:$true] %s131_s18 }
  0x16   :  { %v76_v19 = vunpack.c.0.s8 %v75_v14  ;;  %v102_v31 = vsub.s32 0, %v78_v20  ;;  %v106_v32 = vsub.s32 1, %v78_v20  ;;  %s170_s20 = scalar_lea.vmem %s132_s18, 128  ;;  %p175_p9 = scmp.lt.s32.totalorder %s132_s18, %s132_s18 }
  0x17   :  { %v57_v9 = vadd.f32 %v56_v7, %v42_v5  ;;  %v63_v10 = vadd.f32 %v62_v8, %v43_v6  ;;  %p171_p8 = scmp.ne.s32.totalorder %s132_s18, %s170_s20  ;;  %p176_p10 = scmp.lt.s32.totalorder %s170_s20, %s170_s20 }
  0x18   :  { %v79_v25 = vsub.s32 %v76_v19, %v78_v20 }
  0x19   :  { %v58_v11 = vrot.slane %v57_v9, 2  ;;  %v64_v12 = vrot.slane %v63_v10, 2  ;;  %p177_p11 = por %p176_p10, %p175_p9 }
  0x1b   :  { %v59_v15 = vadd.f32 %v58_v11, %v57_v9  ;;  %v65_v16 = vadd.f32 %v64_v12, %v63_v10  ;;  %p178_p12 = pnand %p177_p11, %p171_p8 }
  0x1c   :  { %v68_v28 = vld [vmem:[#allocation2] sm:$0x3] }
  0x1d   :  { %v60_v17 = vrot.slane %v59_v15, 1  ;;  %v66_v18 = vrot.slane %v65_v16, 1 }
  0x1f   :  { %v61_v21 = vadd.f32 %v60_v17, %v59_v15  ;;  %v67_v22 = vadd.f32 %v66_v18, %v65_v16 }
  0x21   :  { %v69_v23 = vmul.f32 %v61_v21, %v61_v21  ;;  %v70_v24 = vmul.f32 %v67_v22, %v67_v22 }
  0x23   :  { %v73_v26 = vcombine.low %v69_v23, %v70_v24 }
  0x25   :  { %v80_v27 = vrot.slane %v73_v26, %v79_v25 }
  0x27   :  { %v87_v29 = vrot.slane %v80_v27, %v79_v25 }
  0x29   :  { %v89_v30 = vadd.f32 %v87_v29, %v68_v28 }
  0x2b   :  { %94 = vst.msk [vmem:[#allocation2] sm:$0x3] %vm222_vm0, %v89_v30 }
  0x32   :  { %v98_v33 = vld [vmem:[#allocation2] sm:$0x3] }
  0x33   :  { %v103_v34 = vrot.slane %v98_v33, %v102_v31  ;;  %v107_v35 = vrot.slane %v98_v33, %v106_v32 }
  0x35   :  { %v111_v36 = vsel %vm110_vm1, %v103_v34, 0.0  ;;  %v112_v37 = vsel %vm110_vm1, %v107_v35, 0.0 }
  0x36   :  { %v113_v38 = vadd.f32 %v112_v37, %v111_v36 }
  0x38   :  { %114 = vadd.xlane.f32.xlu0 %v113_v38 }
  0xc5   :  { %v115_v39 = vpop.xlane.xlu0 %114 }
  0xc6   :  { %v116_v40 = vrot.slane %v115_v39, 4 }
  0xc8   :  { %v117_v41 = vadd.f32 %v116_v40, %v115_v39 }
  0xca   :  { %v118_v42 = vrot.slane %v117_v41, 2 }
  0xcc   :  { %v119_v43 = vadd.f32 %v118_v42, %v117_v41 }
  0xce   :  { %v120_v44 = vrot.slane %v119_v43, 1 }
  0xd0   :  { %v121_v45 = vadd.f32 %v120_v44, %v119_v43 }
  0xd2   :  { %142 = vpush %v121_v45 }
 0x103   :  { %s143_s19 = spop %142 }
 0x104   :  { %v123_v46 = vstv %s143_s19 }
 0x105   :  { %124 = vst [vmem:[#allocation6] sm:$0xff] %v123_v46 }
 0x106   :  { %181 = shalt.err (!%p178_p12)
}
 0x107   :  { %s182_s23 = scalar_lea.hbm %s243_s1, 128 }
 0x108   :  { %p183_p13 = scmp.ne.s32.totalorder %s243_s1, %s182_s23  ;;  %p186_p0 = scmp.lt.u32.totalorder %s182_s23, %s243_s1 }
 0x10a   :  { %p188_p1 = pnand %p186_p0, %p183_p13 }
 0x10c   :  { %191 = shalt.err (!%p188_p1)
}
 0x10d   :  { %134 = dma.vmem_to_hbm [thread:$0]  %s132_s18, 128, %s243_s1, [#allocation5]  }
 0x10e   :  { %194 = dma.done.wait [#allocation5], 128  }
 0x10f   :  { %195 = vsyncadd [#allocation5], 4294967168 }
 0x110   :  { %138 = vsyncpa [#allocation4], 1 }
 0x111   :  { %139 = vsyncpa [#allocation5], 1 }

</bundles_post_ra>
